<compile_context>
chip_gen: v7x
topology: tpu7x:2x2x1
jax: 0.10.0
libtpu: 0.0.40
codegen_flags: <defaults>
</compile_context>

<pallas_src>
import jax
import jax.numpy as jnp
from jax.experimental import pallas as pl
from jax.experimental.pallas import tpu as pltpu

EPS = 1e-5  # BatchNorm2d default eps


# ----------------------------- Pallas kernel ------------------------------ #
def spatial_weight_kernel(w_ref, patches_ref, out_ref):
    """One lane-chunk of output pixels.

    w_ref:       (8, Kp)   folded weights; rows = [conv1+b1, conv2+b2,
                           fuse_w1, fuse_w2, fuse_b, 0, 0, 0] (scalars sit on
                           the ones-feature column).
    patches_ref: (Kp, PT)  im2col features (incl. ones row) x pixel chunk.
    out_ref:     (1, PT)   sigmoid spatial weight for the chunk.
    """
    # Single MXU matmul: rows 0/1 are the two BN-folded conv channels (+bias),
    # rows 2..4 pick up only the ones-row -> lane-broadcast fuse constants.
    z = jnp.dot(w_ref[...], patches_ref[...],
                preferred_element_type=jnp.float32)          # (8, PT) f32
    fw1 = z[2:3, :]
    fw2 = z[3:4, :]
    fb = z[4:5, :]
    # Mish(v) = v * tanh(softplus(v)) — numerically stable, lane-dense.  The
    # full (8, PT) tile occupies the same number of vregs as a 2-row slice, so
    # computing it whole costs no extra EUP pushes and avoids a relayout.
    zm = z * jnp.tanh(jax.nn.softplus(z))
    # 1x1 fuse conv (+ folded BN): lane-wise FMAs, no cross-lane reduce.
    f = fw1 * zm[0:1, :] + fw2 * zm[1:2, :] + fb             # (1, PT)
    out_ref[...] = jax.nn.sigmoid(f)


# ------------------------------- Wrapper ----------------------------------- #
def _round_up(v, m):
    return (v + m - 1) // m * m


def _fold_bn(gamma, beta, mean, var):
    s = gamma / jnp.sqrt(var + EPS)
    return s, beta - mean * s


def _im2col_t(x_pad, stride, dilation, ho, wo):
    """(N, C, Hp, Wp) -> (C*9, N*ho*wo), feature row order (c, kh, kw)."""
    n, c, _, _ = x_pad.shape
    taps = []
    for kh in range(3):
        for kw in range(3):
            taps.append(jax.lax.slice(
                x_pad,
                (0, 0, kh * dilation, kw * dilation),
                (n, c,
                 kh * dilation + stride * (ho - 1) + 1,
                 kw * dilation + stride * (wo - 1) + 1),
                (1, 1, stride, stride)))                      # (N, C, ho, wo)
    cols = jnp.stack(taps, axis=0)                            # (9, N, C, ho, wo)
    cols = cols.transpose(2, 0, 1, 3, 4)                      # (C, 9, N, ho, wo)
    return cols.reshape(c * 9, n * ho * wo)


def spatial_weight_forward(x, params, compute_dtype=jnp.bfloat16):
    """x: (N, C, H, W) float32 NCHW -> (N, 1, (H+1)//2, (W+1)//2) float32."""
    n, c, h, w = x.shape
    ho, wo = (h + 1) // 2, (w + 1) // 2     # PyTorch k=3, s=2 with pad=d
    p_pix = ho * wo
    rows = n * p_pix                        # total output pixels (lane axis)
    c9 = c * 9
    kfeat = 2 * c9 + 1                      # conv1 taps | conv2 taps | ones(bias)
    kp = _round_up(kfeat, 8)

    # --- glue: im2col straight into the lane-dense (Kp, N*P) layout --------
    x_c = x.astype(compute_dtype)                          # cast once, up front
    xp1 = jnp.pad(x_c, ((0, 0), (0, 0), (1, 1), (1, 1)))   # k3 s2 d1 -> pad 1
    xp2 = jnp.pad(x_c, ((0, 0), (0, 0), (2, 2), (2, 2)))   # k3 s2 d2 -> pad 2
    pat1 = _im2col_t(xp1, 2, 1, ho, wo)                    # (C*9, rows)
    pat2 = _im2col_t(xp2, 2, 2, ho, wo)                    # (C*9, rows)
    ones = jnp.ones((1, rows), compute_dtype)
    feat = jnp.concatenate([pat1, pat2, ones], axis=0)     # (kfeat, rows)

    p_tile = min(4096, _round_up(rows, 128))               # lane chunk size
    rows_pad = _round_up(rows, p_tile)
    patches = jnp.pad(feat, ((0, kp - kfeat), (0, rows_pad - rows)))  # (Kp, rows_pad)

    # --- glue: fold BN (eval-mode running stats) into the conv weights -----
    s1, b1 = _fold_bn(params["bn1_gamma"], params["bn1_beta"],
                      params["bn1_mean"], params["bn1_var"])
    s2, b2 = _fold_bn(params["bn2_gamma"], params["bn2_beta"],
                      params["bn2_mean"], params["bn2_var"])
    sf, bf = _fold_bn(params["bnf_gamma"], params["bnf_beta"],
                      params["bnf_mean"], params["bnf_var"])
    w1 = params["conv1_w"][0].reshape(-1) * s1[0]          # (C*9,) order (c,kh,kw)
    w2 = params["conv2_w"][0].reshape(-1) * s2[0]          # (C*9,)
    fw = params["convf_w"][0, :, 0, 0] * sf[0]             # (2,)

    zc9 = jnp.zeros((c9,), jnp.float32)
    z2c9 = jnp.zeros((2 * c9,), jnp.float32)
    pad_k = jnp.zeros((kp - kfeat,), jnp.float32)
    row0 = jnp.concatenate([w1, zc9, b1, pad_k])           # conv1 (+BN bias)
    row1 = jnp.concatenate([zc9, w2, b2, pad_k])           # conv2 (+BN bias)
    row2 = jnp.concatenate([z2c9, fw[0:1], pad_k])         # fuse weight for x1
    row3 = jnp.concatenate([z2c9, fw[1:2], pad_k])         # fuse weight for x2
    row4 = jnp.concatenate([z2c9, bf, pad_k])              # fuse (+BN) bias
    w_all = jnp.stack(
        [row0, row1, row2, row3, row4] + [jnp.zeros((kp,), jnp.float32)] * 3,
        axis=0).astype(compute_dtype)                      # (8, Kp)

    # --- Pallas hot path ----------------------------------------------------
    num_chunks = rows_pad // p_tile
    out = pl.pallas_call(
        spatial_weight_kernel,
        out_shape=jax.ShapeDtypeStruct((1, rows_pad), jnp.float32),
        grid_spec=pltpu.PrefetchScalarGridSpec(
            num_scalar_prefetch=0,
            grid=(num_chunks,),
            in_specs=[
                pl.BlockSpec((8, kp), lambda i: (0, 0)),       # folded weights (resident)
                pl.BlockSpec((kp, p_tile), lambda i: (0, i)),  # pixel chunk
            ],
            out_specs=pl.BlockSpec((1, p_tile), lambda i: (0, i)),
        ),
        compiler_params=pltpu.CompilerParams(
            dimension_semantics=("parallel",)),   # chunks independent (v7x 2 TCs)
    )(w_all, patches)

    return out[0, :rows].reshape(n, 1, ho, wo)


# --------------------------- plain-JAX reference --------------------------- #
def spatial_weight_reference(x, params):
    def conv_bn(x, w, gamma, beta, mean, var, stride, dilation, padding):
        y = jax.lax.conv_general_dilated(
            x, w, window_strides=(stride, stride),
            padding=((padding, padding), (padding, padding)),
            rhs_dilation=(dilation, dilation),
            dimension_numbers=("NCHW", "OIHW", "NCHW"))
        s = gamma / jnp.sqrt(var + EPS)
        return y * s[None, :, None, None] + (beta - mean * s)[None, :, None, None]

    mish = lambda v: v * jnp.tanh(jax.nn.softplus(v))
    x1 = mish(conv_bn(x, params["conv1_w"], params["bn1_gamma"], params["bn1_beta"],
                      params["bn1_mean"], params["bn1_var"], 2, 1, 1))
    x2 = mish(conv_bn(x, params["conv2_w"], params["bn2_gamma"], params["bn2_beta"],
                      params["bn2_mean"], params["bn2_var"], 2, 2, 2))
    cat = jnp.concatenate([x1, x2], axis=1)
    wgt = conv_bn(cat, params["convf_w"], params["bnf_gamma"], params["bnf_beta"],
                  params["bnf_mean"], params["bnf_var"], 1, 1, 0)
    return jax.nn.sigmoid(wgt)


# ------------------------------ parameter init ----------------------------- #
def make_params(key, in_channels):
    ks = jax.random.split(key, 12)

    def bn(k, ch):
        k1, k2, k3, k4 = jax.random.split(k, 4)
        return (jax.random.uniform(k1, (ch,), jnp.float32, 0.5, 1.5),     # gamma
                0.1 * jax.random.normal(k2, (ch,), jnp.float32),          # beta
                0.1 * jax.random.normal(k3, (ch,), jnp.float32),          # running_mean
                jnp.abs(jax.random.normal(k4, (ch,), jnp.float32)) + .5)  # running_var

    g1, b1, m1, v1 = bn(ks[0], 1)
    g2, b2, m2, v2 = bn(ks[1], 1)
    gf, bff, mf, vf = bn(ks[2], 1)
    return {
        "conv1_w": 0.3 * jax.random.normal(ks[3], (1, in_channels, 3, 3), jnp.float32),
        "conv2_w": 0.3 * jax.random.normal(ks[4], (1, in_channels, 3, 3), jnp.float32),
        "convf_w": 0.5 * jax.random.normal(ks[5], (1, 2, 1, 1), jnp.float32),
        "bn1_gamma": g1, "bn1_beta": b1, "bn1_mean": m1, "bn1_var": v1,
        "bn2_gamma": g2, "bn2_beta": b2, "bn2_mean": m2, "bn2_var": v2,
        "bnf_gamma": gf, "bnf_beta": bff, "bnf_mean": mf, "bnf_var": vf,
    }


if __name__ == "__main__":
    key = jax.random.PRNGKey(0)
    kx, kparam = jax.random.split(key)
    N, C, H, W = 2, 4, 16, 16
    x = jax.random.normal(kx, (N, C, H, W), jnp.float32)
    params = make_params(kparam, C)

    ref = jax.block_until_ready(spatial_weight_reference(x, params))

    # Exact path (f32 compute): tight check of kernel / layout logic.
    out_f32 = jax.block_until_ready(
        spatial_weight_forward(x, params, compute_dtype=jnp.float32))
    assert out_f32.shape == (N, 1, (H + 1) // 2, (W + 1) // 2), out_f32.shape
    assert jnp.allclose(out_f32, ref, rtol=1e-5, atol=1e-5), \
        f"f32 max abs err {jnp.max(jnp.abs(out_f32 - ref))}"

    # Default bf16 fast path (halves HBM bytes for this memory-bound op).
    out_bf16 = jax.block_until_ready(spatial_weight_forward(x, params))
    assert out_bf16.shape == (N, 1, (H + 1) // 2, (W + 1) // 2), out_bf16.shape
    assert jnp.allclose(out_bf16, ref, rtol=2e-2, atol=2e-2), \
        f"bf16 max abs err {jnp.max(jnp.abs(out_bf16 - ref))}"

    print("KERNEL_OK")
</pallas_src>

<mosaic_0001>
module attributes {stable_mosaic.version = 11 : i64} {
  func.func @spatial_weight_kernel(%arg0: i32, %arg1: memref<8x80xf32, #tpu.memory_space<vmem>>, %arg2: memref<80x128xf32, #tpu.memory_space<vmem>>, %arg3: memref<1x128xf32, #tpu.memory_space<vmem>>) attributes {dimension_semantics = [#tpu.dimension_semantics<parallel>], iteration_bounds = array<i64: 1>, scalar_prefetch = 0 : i64, scratch_operands = 0 : i64, tpu.core_type = #tpu.core_type<tc>, window_params = [{pipeline_mode = #tpu.pipeline_mode<synchronous>, transform_indices = @transform_0, window_bounds = array<i64: 8, 80>}, {transform_indices = @transform_1, window_bounds = array<i64: 80, 128>}, {transform_indices = @transform_2, window_bounds = array<i64: 1, 128>}]} {
    %c0 = arith.constant 0 : index
    %c0_0 = arith.constant 0 : index
    %0 = vector.load %arg1[%c0, %c0_0] : memref<8x80xf32, #tpu.memory_space<vmem>>, vector<8x80xf32>
    %c0_1 = arith.constant 0 : index
    %c0_2 = arith.constant 0 : index
    %1 = vector.load %arg2[%c0_1, %c0_2] : memref<80x128xf32, #tpu.memory_space<vmem>>, vector<80x128xf32>
    %cst = arith.constant dense<0.000000e+00> : vector<8x128xf32>
    %2 = tpu.matmul %0, %1, %cst {dimension_numbers = #tpu.dot_dimension_numbers<[1], [0], [0], [1], [0, 0, 1, 1], [], []>} : vector<8x80xf32>, vector<80x128xf32>, vector<8x128xf32> -> vector<8x128xf32>
    %3 = vector.extract_strided_slice %2 {offsets = [2, 0], sizes = [1, 128], strides = [1, 1]} : vector<8x128xf32> to vector<1x128xf32>
    %4 = vector.extract_strided_slice %2 {offsets = [3, 0], sizes = [1, 128], strides = [1, 1]} : vector<8x128xf32> to vector<1x128xf32>
    %5 = vector.extract_strided_slice %2 {offsets = [4, 0], sizes = [1, 128], strides = [1, 1]} : vector<8x128xf32> to vector<1x128xf32>
    %cst_3 = arith.constant 0.000000e+00 : f32
    %6 = vector.broadcast %cst_3 : f32 to vector<8x128xf32>
    %7 = arith.maximumf %2, %6 : vector<8x128xf32>
    %8 = vector.broadcast %cst_3 : f32 to vector<8x128xf32>
    %9 = arith.subf %2, %8 : vector<8x128xf32>
    %10 = arith.cmpf one, %9, %9 : vector<8x128xf32>
    %11 = vector.broadcast %cst_3 : f32 to vector<8x128xf32>
    %12 = arith.addf %2, %11 : vector<8x128xf32>
    %13 = math.absf %9 : vector<8x128xf32>
    %cst_4 = arith.constant 0.000000e+00 : f32
    %14 = vector.broadcast %cst_4 : f32 to vector<8x128xf32>
    %15 = arith.subf %14, %13 : vector<8x128xf32>
    %16 = math.exp %15 : vector<8x128xf32>
    %17 = math.log1p %16 : vector<8x128xf32>
    %18 = arith.addf %7, %17 : vector<8x128xf32>
    %19 = arith.select %10, %12, %18 : vector<8x128xi1>, vector<8x128xf32>
    %20 = math.tanh %19 : vector<8x128xf32>
    %21 = arith.mulf %2, %20 : vector<8x128xf32>
    %22 = vector.extract_strided_slice %21 {offsets = [0, 0], sizes = [1, 128], strides = [1, 1]} : vector<8x128xf32> to vector<1x128xf32>
    %23 = arith.mulf %3, %22 : vector<1x128xf32>
    %24 = vector.extract_strided_slice %21 {offsets = [1, 0], sizes = [1, 128], strides = [1, 1]} : vector<8x128xf32> to vector<1x128xf32>
    %25 = arith.mulf %4, %24 : vector<1x128xf32>
    %26 = arith.addf %23, %25 : vector<1x128xf32>
    %27 = arith.addf %26, %5 : vector<1x128xf32>
    %28 = arith.negf %27 : vector<1x128xf32>
    %29 = math.exp %28 : vector<1x128xf32>
    %cst_5 = arith.constant 1.000000e+00 : f32
    %30 = vector.broadcast %cst_5 : f32 to vector<1x128xf32>
    %31 = arith.addf %30, %29 : vector<1x128xf32>
    %32 = arith.divf %30, %31 : vector<1x128xf32>
    %c0_6 = arith.constant 0 : index
    %c0_7 = arith.constant 0 : index
    %33 = vector.load %arg3[%c0_6, %c0_7] : memref<1x128xf32, #tpu.memory_space<vmem>>, vector<1x128xf32>
    tpu.vector_store %arg3[%c0_6, %c0_7], %32 {strides = array<i32>} : memref<1x128xf32, #tpu.memory_space<vmem>>, vector<1x128xf32>,
    return
  }
  func.func @transform_0(%arg0: i32) -> (i32, i32) {
    %c0_i32 = arith.constant 0 : i32
    %c0_i32_0 = arith.constant 0 : i32
    %c0_i32_1 = arith.constant 0 : i32
    return %c0_i32, %c0_i32_0 : i32, i32
  }
  func.func @transform_1(%arg0: i32) -> (i32, i32) {
    %c0_i32 = arith.constant 0 : i32
    %c0_i32_0 = arith.constant 0 : i32
    return %c0_i32, %arg0 : i32, i32
  }
  func.func @transform_2(%arg0: i32) -> (i32, i32) {
    %c0_i32 = arith.constant 0 : i32
    %c0_i32_0 = arith.constant 0 : i32
    return %c0_i32, %arg0 : i32, i32
  }
}

</mosaic_0001>

<bundles_post_ra>
// kernel: tpu_custom_call.1
= control target key start
LH: loop header
LB: loop body
LE: loop exit
PB: predicated region body
PF: predicated region fallthrough
CT: control target
= control target key end

     0   :  { %7 = vsyncpa [#allocation3], 0  ;;  %s385_s0 = inlined_call_operand.hbm [shape: f32[8,80], index: 0, kind: input, shape index: {}]   ;;  %s386_s1 = inlined_call_operand.hbm [shape: f32[80,128], index: 1, kind: input, shape index: {}]   ;;  %s387_s2 = inlined_call_operand.hbm [shape: f32[1,128], index: 2, kind: output, shape index: {}]  }
   0x1   :  { %8 = vsyncpa [#allocation6], 0 }
   0x2   :  { %9 = vsyncpa [#allocation4], 0  ;;  %s319_s9 = smov [#allocation2]   ;;  %s320_s11 = smov [#allocation5]  }
   0x3   :  { %s16_s10 = sshll.u32 %s319_s9, 4  ;;  %s25_s12 = sshll.u32 %s320_s11, 4  ;;  %s17_s10 = int_to_ptr.vmem [resolvable:$true] %s16_s10  ;;  %s342_s12 = int_to_ptr.vmem [resolvable:$true] %s25_s12 }
   0x4   :  { %s247_s15 = scalar_lea.hbm %s385_s0, 128 }
   0x5   :  { %p248_p0 = scmp.ne.s32.totalorder %s385_s0, %s247_s15  ;;  %p251_p1 = scmp.lt.u32.totalorder %s247_s15, %s385_s0 }
   0x7   :  { %p253_p2 = pnand %p251_p1, %p248_p0 }
   0x9   :  { %256 = shalt.err (!%p253_p2)
}
   0xa   :  { %s257_s20 = scalar_lea.vmem %s17_s10, 128  ;;  %p262_p4 = scmp.lt.s32.totalorder %s17_s10, %s17_s10 }
   0xb   :  { %p258_p3 = scmp.ne.s32.totalorder %s17_s10, %s257_s20  ;;  %p263_p5 = scmp.lt.s32.totalorder %s257_s20, %s257_s20 }
   0xd   :  { %p264_p6 = por %p263_p5, %p262_p4 }
   0xf   :  { %p265_p7 = pnand %p264_p6, %p258_p3 }
  0x11   :  { %268 = shalt.err (!%p265_p7)
}
  0x12   :  { %19 = dma.hbm_to_vmem [thread:$0]  %s385_s0, 128, %s17_s10, [#allocation3]  }
  0x13   :  { %s269_s25 = scalar_lea.hbm %s386_s1, 1280 }
  0x14   :  { %p270_p8 = scmp.ne.s32.totalorder %s386_s1, %s269_s25  ;;  %p273_p9 = scmp.lt.u32.totalorder %s269_s25, %s386_s1 }
  0x16   :  { %p275_p10 = pnand %p273_p9, %p270_p8 }
  0x18   :  { %278 = shalt.err (!%p275_p10)
}
  0x19   :  { %s279_s30 = scalar_lea.vmem %s342_s12, 1280  ;;  %p284_p12 = scmp.lt.s32.totalorder %s342_s12, %s342_s12 }
  0x1a   :  { %p280_p11 = scmp.ne.s32.totalorder %s342_s12, %s279_s30  ;;  %p285_p13 = scmp.lt.s32.totalorder %s279_s30, %s279_s30 }
  0x1c   :  { %p286_p0 = por %p285_p13, %p284_p12 }
  0x1e   :  { %p287_p1 = pnand %p286_p0, %p280_p11 }
  0x20   :  { %290 = shalt.err (!%p287_p1)
}
  0x21   :  { %s321_s0 = smov 128   ;;  %s322_s3 = smov 8  }
  0x22   :  { %31 = dma.hbm_to_vmem [thread:$0]  %s386_s1, 1280, %s342_s12, [#allocation6], %s321_s0, %s321_s0, %s322_s3  }
  0x23   :  { %313 = dma.done.wait [#allocation3], 128  }
  0x24   :  { %314 = vsyncadd [#allocation3], 4294967168 }
  0x25   :  { %315 = dma.done.wait [#allocation6], 1280  }
  0x26   :  { %316 = vsyncadd [#allocation6], 4294966016  ;;  %v323_v0 = vmov 0.0|0.0   ;;  %vm324_vm0 = vmmov 0   ;;  %v325_v1 = vmov 0.0   ;;  %v39_v2 = vld [vmem:[#allocation5] sm:$0xff] }
  0x27   :  { %214 = vmatprep.subr.bf16.mxu0 %v323_v0  ;;  %211 = vmatprep.mubr.msk.f32.mxu0 %vm324_vm0, %v325_v1  ;;  %v40_v3 = vld [vmem:[#allocation5 + $0x8] sm:$0xff]  ;;  %v41_v4 = vld [vmem:[#allocation5 + $0x10] sm:$0xff]  ;;  %v42_v6 = vld [vmem:[#allocation5 + $0x18] sm:$0xff]  ;;  %vm49_vm1 = vcmask 654336   ;;  %s326_s1 = smov [#allocation7]  }
  0x28   :  { %v215_v5 = vpack.c.bf16 %v40_v3, %v39_v2  ;;  %v218_v7 = vpack.c.bf16 %v42_v6, %v41_v4  ;;  %v43_v8 = vld [vmem:[#allocation5 + $0x20] sm:$0xff]  ;;  %v44_v9 = vld [vmem:[#allocation5 + $0x28] sm:$0xff]  ;;  %v45_v11 = vld [vmem:[#allocation5 + $0x30] sm:$0xff]  ;;  %s168_s6 = sshll.u32 %s326_s1, 4  ;;  %s169_s6 = int_to_ptr.vmem [resolvable:$true] %s168_s6 }
  0x29   :  { %v221_v10 = vpack.c.bf16 %v44_v9, %v43_v8  ;;  %v46_v12 = vld [vmem:[#allocation5 + $0x38] sm:$0xff]  ;;  %v47_v14 = vld [vmem:[#allocation5 + $0x40] sm:$0xff]  ;;  %v48_v15 = vld [vmem:[#allocation5 + $0x48] sm:$0xff]  ;;  %s291_s7 = scalar_lea.vmem %s169_s6, 16  ;;  %s295_s8 = scalar_lea.vmem %s169_s6, 32 }
  0x2a   :  { %216 = vmatpush3.bf16.msra.mxu0 %v215_v5  ;;  %v224_v13 = vpack.c.bf16 %v46_v12, %v45_v11  ;;  %v227_v16 = vpack.c.bf16 %v48_v15, %v47_v14  ;;  %v38_v17 = vld [vmem:[#allocation2] sm:$0xff]  ;;  %p292_p2 = scmp.ne.s32.totalorder %s169_s6, %s291_s7  ;;  %p296_p3 = scmp.lt.s32.totalorder %s169_s6, %s169_s6 }
  0x2b   :  { %217 = vmatprep.subr.bf16.mxu0 %v323_v0  ;;  %p297_p4 = scmp.lt.s32.totalorder %s295_s8, %s291_s7 }
  0x2d   :  { %p298_p5 = por %p297_p4, %p296_p3 }
  0x2e   :  { %219 = vmatpush3.bf16.msra.mxu0 %v218_v7 }
  0x2f   :  { %220 = vmatprep.subr.bf16.mxu0 %v323_v0  ;;  %p299_p6 = pnand %p298_p5, %p292_p2 }
  0x32   :  { %222 = vmatpush3.bf16.msra.mxu0 %v221_v10 }
  0x33   :  { %223 = vmatprep.subr.bf16.mxu0 %v323_v0 }
  0x36   :  { %225 = vmatpush3.bf16.msra.mxu0 %v224_v13 }
  0x37   :  { %226 = vmatprep.subr.bf16.mxu0 %v323_v0 }
  0x3a   :  { %228 = vmatpush3.bf16.msra.mxu0 %v227_v16 }
  0x3d   :  { %212 = vmatmul.mubr.msk.f32.vlgmr.msra.gmra.mrb[0].mxu0 %vm49_vm1, %v38_v17 }
 0x110   :  { %v119_v18 = vpop.f32.mrb[0].mxu0 }
 0x111   :  { %v126_v19 = vand.u32 2147483647, %v119_v18  ;;  %v213_v20 = vpop.f32.mrb[1].mxu0  ;;  %v123_v31 = vmax.f32 %v119_v18, 0.0  ;;  %vm124_vm3 = vcmp.ne.f32.partialorder %v119_v18, %v119_v18  ;;  %v152_v41 = vrot.slane %v119_v18, 2 }
 0x113   :  { %v127_v21 = vsub.f32 0.0, %v126_v19 }
 0x115   :  { %v128_v22 = vmul.f32 1.442695, %v127_v21 }
 0x117   :  { %237 = vpow2.f32 %v128_v22 }
 0x121   :  { %v238_v23 = vpop.eup %237 }
 0x122   :  { %v130_v24 = vadd.f32 1.0, %v238_v23  ;;  %v133_v25 = vmul.f32 -0.5, %v238_v23  ;;  %v136_v27 = vand.u32 2147483647, %v238_v23 }
 0x124   :  { %239 = vlog2.f32 %v130_v24  ;;  %v134_v26 = vadd.f32 1.0, %v133_v25  ;;  %vm137_vm2 = vcmp.lt.f32.partialorder %v136_v27, 0.0004427343 }
 0x126   :  { %v135_v30 = vmul.f32 %v238_v23, %v134_v26 }
 0x12e   :  { %v240_v28 = vpop.eup %239 }
 0x12f   :  { %v132_v29 = vmul.f32 0.6931472, %v240_v28 }
 0x131   :  { %v138_v32 = vsel %vm137_vm2, %v135_v30, %v132_v29 }
 0x132   :  { %v139_v33 = vadd.f32 %v138_v32, %v123_v31 }
 0x134   :  { %v140_v34 = vsel %vm124_vm3, %v119_v18, %v139_v33 }
 0x135   :  { %241 = vtanh.f32 %v140_v34 }
 0x13f   :  { %v242_v35 = vpop.eup %241 }
 0x140   :  { %v142_v36 = vmul.f32 %v242_v35, %v119_v18 }
 0x142   :  { %v144_v37 = vrot.slane %v142_v36, 6 }
 0x144   :  { %v146_v38 = vmul.f32 %v144_v37, %v119_v18 }
 0x146   :  { %v148_v39 = vrot.slane %v146_v38, 1 }
 0x148   :  { %v150_v40 = vadd.f32 %v148_v39, %v146_v38 }
 0x14a   :  { %v154_v42 = vadd.f32 %v152_v41, %v150_v40 }
 0x14c   :  { %v179_v43 = vmul.f32 -1.442695, %v154_v42 }
 0x14e   :  { %243 = vpow2.f32 %v179_v43 }
 0x158   :  { %v244_v44 = vpop.eup %243 }
 0x159   :  { %v158_v45 = vadd.f32 1.0, %v244_v44 }
 0x15b   :  { %245 = vrcp.f32 %v158_v45 }
 0x165   :  { %v246_v46 = vpop.eup %245 }
 0x166   :  { %161 = vst [vmem:[#allocation7 - $0x2] sm:$0x4] %v246_v46 }
 0x167   :  { %302 = shalt.err (!%p299_p6)
}
 0x168   :  { %s303_s11 = scalar_lea.hbm %s387_s2, 16 }
 0x169   :  { %p304_p7 = scmp.ne.s32.totalorder %s387_s2, %s303_s11  ;;  %p307_p8 = scmp.lt.u32.totalorder %s303_s11, %s387_s2 }
 0x16b   :  { %p309_p9 = pnand %p307_p8, %p304_p7 }
 0x16d   :  { %312 = shalt.err (!%p309_p9)
}
 0x16e   :  { %171 = dma.vmem_to_hbm [thread:$0]  %s169_s6, 16, %s387_s2, [#allocation4]  }
 0x16f   :  { %317 = dma.done.wait [#allocation4], 16  }
 0x170   :  { %318 = vsyncadd [#allocation4], 4294967280 }
 0x171   :  { %175 = vsyncpa [#allocation3], 1 }
 0x172   :  { %176 = vsyncpa [#allocation6], 1 }
 0x173   :  { %177 = vsyncpa [#allocation4], 1 }

</bundles_post_ra>
